<compile_context>
chip_gen: v7x
topology: tpu7x:2x2x1
jax: 0.10.0
libtpu: 0.0.40
codegen_flags: <defaults>
</compile_context>

<pallas_src>
import functools

import jax
import jax.numpy as jnp
from jax.experimental import pallas as pl
from jax.experimental.pallas import tpu as pltpu


def _round_up(x, m):
    return ((x + m - 1) // m) * m


def _pair(v):
    if isinstance(v, (tuple, list)):
        return (int(v[0]), int(v[1]))
    return (int(v), int(v))


# --------------------------------------------------------------------------- #
# Pallas kernel: grouped matmul + bias with K-tiled f32 accumulator.
# --------------------------------------------------------------------------- #
def _matmul_bias_kernel(x_ref, w_ref, b_ref, o_ref, acc_ref):
    # x_ref: [tm, tk] bf16, w_ref: [tk, tn] bf16, b_ref: [1, tn] f32,
    # o_ref: [tm, tn] f32, acc_ref: [tm, tn] f32 scratch (resident over K steps).
    k = pl.program_id(3)

    @pl.when(k == 0)
    def _init():
        acc_ref[...] = jnp.zeros_like(acc_ref)

    acc_ref[...] += jnp.dot(x_ref[...], w_ref[...],
                            preferred_element_type=jnp.float32)

    @pl.when(k == pl.num_programs(3) - 1)
    def _finalize():
        o_ref[...] = (acc_ref[...] + b_ref[...]).astype(o_ref.dtype)


def _grouped_matmul_bias(patches, w, bias, *, tm_max=256, tn_max=256, tk_max=1024):
    """patches: [G, M, Kp] bf16, w: [G, Kp, Np] bf16, bias: [G, 1, Np] f32
       -> [G, M, Np] f32."""
    G, M, Kp = patches.shape
    Np = w.shape[2]

    tm = min(tm_max, _round_up(M, 8))
    tn = tn_max if (Np % tn_max == 0) else 128
    tn = min(tn, Np)
    tk = Kp if Kp <= tk_max else 512
    assert Np % tn == 0 and Kp % tk == 0, (Np, tn, Kp, tk)

    grid = (G, pl.cdiv(M, tm), Np // tn, Kp // tk)

    return pl.pallas_call(
        _matmul_bias_kernel,
        out_shape=jax.ShapeDtypeStruct((G, M, Np), jnp.float32),
        grid_spec=pltpu.PrefetchScalarGridSpec(
            num_scalar_prefetch=0,
            grid=grid,
            in_specs=[
                pl.BlockSpec((None, tm, tk), lambda g, i, j, k: (g, i, k)),
                pl.BlockSpec((None, tk, tn), lambda g, i, j, k: (g, k, j)),
                pl.BlockSpec((None, 1, tn), lambda g, i, j, k: (g, 0, j)),
            ],
            out_specs=pl.BlockSpec((None, tm, tn), lambda g, i, j, k: (g, i, j)),
            scratch_shapes=[pltpu.VMEM((tm, tn), jnp.float32)],
        ),
        compiler_params=pltpu.CompilerParams(
            dimension_semantics=("parallel", "parallel", "parallel", "arbitrary")),
    )(patches, w, bias)


# --------------------------------------------------------------------------- #
# JAX-side glue: row-major bf16 patch extraction + one-time weight layout.
# --------------------------------------------------------------------------- #
def _im2col_patches(x, *, kh, kw, strides, padding, dilation, groups, k_pad,
                    dtype=jnp.bfloat16):
    """Build patches directly as [G, B*OH*OW, k_pad] in bf16, K-order (kh, kw, Cg)."""
    B, C, H, W = x.shape
    sh, sw = strides
    ph, pw = padding
    dh, dw = dilation
    oh = (H + 2 * ph - dh * (kh - 1) - 1) // sh + 1
    ow = (W + 2 * pw - dw * (kw - 1) - 1) // sw + 1
    G = groups
    Cg = C // G
    Kg = Cg * kh * kw
    M = B * oh * ow

    xp = jnp.pad(x.astype(dtype), ((0, 0), (0, 0), (ph, ph), (pw, pw)))
    xp = xp.transpose(0, 2, 3, 1)                       # NHWC (cheap, un-inflated)

    wins = []
    for i in range(kh):
        for j in range(kw):
            h0, w0 = i * dh, j * dw
            wins.append(xp[:, h0:h0 + (oh - 1) * sh + 1:sh,
                              w0:w0 + (ow - 1) * sw + 1:sw, :])  # [B, oh, ow, C]

    if G == 1:
        pieces = list(wins)
        if k_pad > Kg:
            pieces.append(jnp.zeros((B, oh, ow, k_pad - Kg), dtype))
        patches = jnp.concatenate(pieces, axis=-1).reshape(1, M, k_pad)
    else:
        col = jnp.stack(wins, axis=3)                   # [B, oh, ow, kh*kw, C]
        col = col.reshape(B, oh, ow, kh * kw, G, Cg)
        col = col.transpose(4, 0, 1, 2, 3, 5)           # [G, B, oh, ow, kh*kw, Cg]
        patches = col.reshape(G, M, Kg)
        if k_pad > Kg:
            patches = jnp.pad(patches, ((0, 0), (0, 0), (0, k_pad - Kg)))
    return patches, oh, ow


def _prep_weights(weights, bias, *, groups, k_pad, n_pad, dtype=jnp.bfloat16):
    """weights [O, Cg, kh, kw] -> [G, k_pad, n_pad] bf16 (K-order (kh, kw, Cg)),
       bias [O] -> [G, 1, n_pad] f32."""
    O, Cg, kh, kw = weights.shape
    G = groups
    Og = O // G
    Kg = Cg * kh * kw
    w = weights.reshape(G, Og, Cg, kh, kw).transpose(0, 3, 4, 2, 1)  # [G,kh,kw,Cg,Og]
    w = w.reshape(G, Kg, Og).astype(dtype)
    w = jnp.pad(w, ((0, 0), (0, k_pad - Kg), (0, n_pad - Og)))
    if bias is None:
        b = jnp.zeros((G, 1, n_pad), jnp.float32)
    else:
        b = jnp.pad(bias.astype(jnp.float32).reshape(G, 1, Og),
                    ((0, 0), (0, 0), (0, n_pad - Og)))
    return w, b


@functools.partial(jax.jit, static_argnames=(
    "kh", "kw", "strides", "padding", "dilation", "groups", "k_pad", "og",
    "out_dtype"))
def _conv2d_forward(x, w_prep, b_prep, *, kh, kw, strides, padding, dilation,
                    groups, k_pad, og, out_dtype):
    B = x.shape[0]
    patches, oh, ow = _im2col_patches(
        x, kh=kh, kw=kw, strides=strides, padding=padding, dilation=dilation,
        groups=groups, k_pad=k_pad)
    out = _grouped_matmul_bias(patches, w_prep, b_prep)   # [G, B*oh*ow, n_pad] f32
    out = out[:, :, :og]                                  # drop lane padding
    out = out.reshape(groups, B, oh * ow, og)
    out = out.transpose(1, 0, 3, 2).reshape(B, groups * og, oh, ow)
    return out.astype(out_dtype)


class PallasConv2d:
    """Forward of Conv2d (NCHW, OIHW weights, stride/padding/dilation/groups)."""

    def __init__(self, weights, bias=None, strides=1, padding=0, dilation=1,
                 groups=1):
        weights = jnp.asarray(weights)
        O, Cg, kh, kw = weights.shape
        self.strides = _pair(strides)
        self.padding = _pair(padding)
        self.dilation = _pair(dilation)
        self.groups = int(groups)
        self.kh, self.kw = int(kh), int(kw)
        self.og = O // self.groups
        Kg = Cg * self.kh * self.kw
        # Single K step for moderate K, otherwise 512-wide zero-padded K tiles.
        self.k_pad = Kg if Kg <= 1024 else _round_up(Kg, 512)
        self.n_pad = _round_up(self.og, 128)   # lane-dense output channels
        bias = None if bias is None else jnp.asarray(bias)
        # One-time weight/bias re-layout (bf16, [G, Kpad, Npad]) outside call path.
        self.w, self.b = _prep_weights(weights, bias, groups=self.groups,
                                       k_pad=self.k_pad, n_pad=self.n_pad)

    def __call__(self, x):
        return _conv2d_forward(
            x, self.w, self.b, kh=self.kh, kw=self.kw, strides=self.strides,
            padding=self.padding, dilation=self.dilation, groups=self.groups,
            k_pad=self.k_pad, og=self.og, out_dtype=jnp.dtype(x.dtype))


if __name__ == "__main__":
    key = jax.random.PRNGKey(0)
    kx, kw_, kb = jax.random.split(key, 3)

    B, C, H, W = 2, 4, 16, 16
    O, KH, KW = 8, 3, 3
    x = jax.random.normal(kx, (B, C, H, W), dtype=jnp.float32)
    weights = jax.random.normal(kw_, (O, C, KH, KW), dtype=jnp.float32) * 0.1
    bias = jax.random.normal(kb, (O,), dtype=jnp.float32) * 0.1

    # bf16-rounded copies so the XLA reference sees the same operand precision
    # as the bf16-MXU kernel (accumulation stays f32 in both).
    x_r = x.astype(jnp.bfloat16).astype(jnp.float32)
    w_r = weights.astype(jnp.bfloat16).astype(jnp.float32)

    # --- Test 1: 3x3, stride 1, pad 1, groups 1 ---------------------------- #
    conv = PallasConv2d(weights, bias, strides=(1, 1), padding=(1, 1),
                        dilation=(1, 1), groups=1)
    out = jax.block_until_ready(conv(x))
    ref = jax.lax.conv_general_dilated(
        x_r, w_r, window_strides=(1, 1), padding=((1, 1), (1, 1)),
        rhs_dilation=(1, 1), dimension_numbers=("NCHW", "OIHW", "NCHW"),
        feature_group_count=1) + bias[None, :, None, None]
    assert out.shape == ref.shape, (out.shape, ref.shape)
    assert jnp.allclose(out, ref, atol=2e-3, rtol=2e-3), \
        float(jnp.max(jnp.abs(out - ref)))

    # --- Test 2: grouped + strided (groups=2, stride 2) -------------------- #
    G2 = 2
    w2 = jax.random.normal(kw_, (O, C // G2, KH, KW), dtype=jnp.float32) * 0.1
    w2_r = w2.astype(jnp.bfloat16).astype(jnp.float32)
    conv2 = PallasConv2d(w2, bias, strides=(2, 2), padding=(1, 1),
                         dilation=(1, 1), groups=G2)
    out2 = jax.block_until_ready(conv2(x))
    ref2 = jax.lax.conv_general_dilated(
        x_r, w2_r, window_strides=(2, 2), padding=((1, 1), (1, 1)),
        rhs_dilation=(1, 1), dimension_numbers=("NCHW", "OIHW", "NCHW"),
        feature_group_count=G2) + bias[None, :, None, None]
    assert out2.shape == ref2.shape, (out2.shape, ref2.shape)
    assert jnp.allclose(out2, ref2, atol=2e-3, rtol=2e-3), \
        float(jnp.max(jnp.abs(out2 - ref2)))

    print("KERNEL_OK")
</pallas_src>

<mosaic_0001>
module attributes {stable_mosaic.version = 11 : i64} {
  func.func @_matmul_bias_kernel(%arg0: i32, %arg1: i32, %arg2: i32, %arg3: i32, %arg4: memref<1x256x36xbf16, #tpu.memory_space<vmem>>, %arg5: memref<1x36x128xbf16, #tpu.memory_space<vmem>>, %arg6: memref<1x1x128xf32, #tpu.memory_space<vmem>>, %arg7: memref<1x256x128xf32, #tpu.memory_space<vmem>>, %arg8: memref<256x128xf32, #tpu.memory_space<vmem>>) attributes {dimension_semantics = [#tpu.dimension_semantics<parallel>, #tpu.dimension_semantics<parallel>, #tpu.dimension_semantics<parallel>, #tpu.dimension_semantics<arbitrary>], iteration_bounds = array<i64: 1, 2, 1, 1>, scalar_prefetch = 0 : i64, scratch_operands = 1 : i64, tpu.core_type = #tpu.core_type<tc>, window_params = [{transform_indices = @transform_0, window_bounds = array<i64: 1, 256, 36>}, {transform_indices = @transform_1, window_bounds = array<i64: 1, 36, 128>}, {transform_indices = @transform_2, window_bounds = array<i64: 1, 1, 128>}, {transform_indices = @transform_3, window_bounds = array<i64: 1, 256, 128>}]} {
    %c0_i32 = arith.constant 0 : i32
    %0 = arith.cmpi eq, %arg3, %c0_i32 : i32
    %1 = arith.extui %0 : i1 to i32
    %c0_i32_0 = arith.constant 0 : i32
    %2 = arith.cmpi ne, %1, %c0_i32_0 : i32
    scf.if %2 {
      %cst_12 = arith.constant 0.000000e+00 : f32
      %14 = vector.broadcast %cst_12 : f32 to vector<256x128xf32>
      %c0_13 = arith.constant 0 : index
      %c0_14 = arith.constant 0 : index
      %15 = vector.load %arg8[%c0_13, %c0_14] : memref<256x128xf32, #tpu.memory_space<vmem>>, vector<256x128xf32>
      tpu.vector_store %arg8[%c0_13, %c0_14], %14 {strides = array<i32>} : memref<256x128xf32, #tpu.memory_space<vmem>>, vector<256x128xf32>,
    } else {
    }
    %c0 = arith.constant 0 : index
    %c0_1 = arith.constant 0 : index
    %3 = vector.load %arg8[%c0, %c0_1] : memref<256x128xf32, #tpu.memory_space<vmem>>, vector<256x128xf32>
    %c0_2 = arith.constant 0 : index
    %c0_3 = arith.constant 0 : index
    %c0_4 = arith.constant 0 : index
    %4 = vector.load %arg4[%c0_2, %c0_3, %c0_4] : memref<1x256x36xbf16, #tpu.memory_space<vmem>>, vector<1x256x36xbf16>
    %5 = vector.shape_cast %4 : vector<1x256x36xbf16> to vector<256x36xbf16>
    %c0_5 = arith.constant 0 : index
    %c0_6 = arith.constant 0 : index
    %c0_7 = arith.constant 0 : index
    %6 = vector.load %arg5[%c0_5, %c0_6, %c0_7] : memref<1x36x128xbf16, #tpu.memory_space<vmem>>, vector<1x36x128xbf16>
    %7 = vector.shape_cast %6 : vector<1x36x128xbf16> to vector<36x128xbf16>
    %cst = arith.constant dense<0.000000e+00> : vector<256x128xf32>
    %8 = tpu.matmul %5, %7, %cst {dimension_numbers = #tpu.dot_dimension_numbers<[1], [0], [0], [1], [0, 0, 1, 1], [], []>} : vector<256x36xbf16>, vector<36x128xbf16>, vector<256x128xf32> -> vector<256x128xf32>
    %9 = arith.addf %3, %8 : vector<256x128xf32>
    %c0_8 = arith.constant 0 : index
    %c0_9 = arith.constant 0 : index
    %10 = vector.load %arg8[%c0_8, %c0_9] : memref<256x128xf32, #tpu.memory_space<vmem>>, vector<256x128xf32>
    tpu.vector_store %arg8[%c0_8, %c0_9], %9 {strides = array<i32>} : memref<256x128xf32, #tpu.memory_space<vmem>>, vector<256x128xf32>,
    %c0_i32_10 = arith.constant 0 : i32
    %11 = arith.cmpi eq, %arg3, %c0_i32_10 : i32
    %12 = arith.extui %11 : i1 to i32
    %c0_i32_11 = arith.constant 0 : i32
    %13 = arith.cmpi ne, %12, %c0_i32_11 : i32
    scf.if %13 {
      %c0_12 = arith.constant 0 : index
      %c0_13 = arith.constant 0 : index
      %14 = vector.load %arg8[%c0_12, %c0_13] : memref<256x128xf32, #tpu.memory_space<vmem>>, vector<256x128xf32>
      %c0_14 = arith.constant 0 : index
      %c0_15 = arith.constant 0 : index
      %c0_16 = arith.constant 0 : index
      %15 = vector.load %arg6[%c0_14, %c0_15, %c0_16] : memref<1x1x128xf32, #tpu.memory_space<vmem>>, vector<1x1x128xf32>
      %16 = vector.shape_cast %15 : vector<1x1x128xf32> to vector<1x128xf32>
      %17 = vector.broadcast %16 : vector<1x128xf32> to vector<256x128xf32>
      %18 = arith.addf %14, %17 : vector<256x128xf32>
      %c0_17 = arith.constant 0 : index
      %c0_18 = arith.constant 0 : index
      %c0_19 = arith.constant 0 : index
      %19 = vector.load %arg7[%c0_17, %c0_18, %c0_19] : memref<1x256x128xf32, #tpu.memory_space<vmem>>, vector<1x256x128xf32>
      %20 = vector.shape_cast %19 : vector<1x256x128xf32> to vector<256x128xf32>
      %21 = vector.shape_cast %18 : vector<256x128xf32> to vector<1x256x128xf32>
      tpu.vector_store %arg7[%c0_17, %c0_18, %c0_19], %21 {strides = array<i32>} : memref<1x256x128xf32, #tpu.memory_space<vmem>>, vector<1x256x128xf32>,
    } else {
    }
    return
  }
  func.func @transform_0(%arg0: i32, %arg1: i32, %arg2: i32, %arg3: i32) -> (i32, i32, i32) {
    %c0_i32 = arith.constant 0 : i32
    return %arg0, %arg1, %arg3 : i32, i32, i32
  }
  func.func @transform_1(%arg0: i32, %arg1: i32, %arg2: i32, %arg3: i32) -> (i32, i32, i32) {
    %c0_i32 = arith.constant 0 : i32
    return %arg0, %arg3, %arg2 : i32, i32, i32
  }
  func.func @transform_2(%arg0: i32, %arg1: i32, %arg2: i32, %arg3: i32) -> (i32, i32, i32) {
    %c0_i32 = arith.constant 0 : i32
    %c0_i32_0 = arith.constant 0 : i32
    return %arg0, %c0_i32, %arg2 : i32, i32, i32
  }
  func.func @transform_3(%arg0: i32, %arg1: i32, %arg2: i32, %arg3: i32) -> (i32, i32, i32) {
    %c0_i32 = arith.constant 0 : i32
    return %arg0, %arg1, %arg2 : i32, i32, i32
  }
}

</mosaic_0001>

<bundles_post_ra>
// kernel: _conv2d_forward.1
= control target key start
LH: loop header
LB: loop body
LE: loop exit
PB: predicated region body
PF: predicated region fallthrough
CT: control target
= control target key end

     0   :  { %s1246_s12 = smov 0   ;;  %s1248_s13 = smov 0   ;;  %s1397_s0 = inlined_call_operand.vmem [shape: bf16[1,512,36], index: 0, kind: input, shape index: {}]   ;;  %s1398_s1 = inlined_call_operand.vmem [shape: bf16[1,36,128], index: 1, kind: input, shape index: {}]   ;;  %s1399_s2 = inlined_call_operand.vmem [shape: f32[1,1,128], index: 2, kind: input, shape index: {}]   ;;  %s1400_s3 = inlined_call_operand.vmem [shape: f32[1,512,128], index: 3, kind: output, shape index: {}]  }
   0x1   :  { %s1250_s14 = smov 0  }
   0x2 LB: > { %s35_s15 = sadd.s32 1, %s1220_s13  ;;  %p1051_p0 = scmp.ge.s32.totalorder %s1224_s14, 1  ;;  %s1224_s14 = sphi %s1250_s14, %s13_s14   ;;  %s1220_s13 = sphi %s1248_s13, %s1402_s13   ;;  %s1216_s12 = sphi %s1246_s12, %s1401_s12  }
   0x3   : > { %p37_p1 = scmp.ge.s32.totalorder %s35_s15, 2  ;;  %p214_p2 = scmp.lt.s32.totalorder %s1224_s14, 3 }
   0x5   : > { %s1404_s15 = smov (%p37_p1, %s35_s15), 0  ;;  %p215_p3 = pnand %p1051_p0, %p214_p2 }
   0x6   : > { %v1183_v0 = vld [vmem:[%s1398_s1] sm:$0xff] (!%p215_p3)   ;;  %v1184_v1 = vld [vmem:[%s1398_s1 + $0x8] sm:$0xff] (!%p215_p3)   ;;  %s1052_s20 = sshll.u32 (!%p215_p3), %s1216_s12, 5  ;;  %v1185_v2 = vld [vmem:[%s1398_s1 + $0x10] ss:$0 sps:$4 sm:$0x33] (!%p215_p3)  }
   0x7   : > { %218 = sbr.rel (%p215_p3) target bundleno = 262 (0x106), region = 32  ;;  %1113 = vmatprep.subr.bf16.mxu0 (!%p215_p3), %v1183_v0  ;;  %1151 = vmatprep.subr.bf16.mxu1 (!%p215_p3), %v1183_v0  ;;  %p273_p4 = scmp.lt.s32.totalorder (!%p215_p3), %s1052_s20, 63  ;;  %vm565_vm0 = vcmask (!%p215_p3), 1041408   ;;  %vm516_vm1 = vcmask (!%p215_p3), 293888   ;;  %v1317_v20 = vld [vmem:[%s1399_s2] ss:$0 sm:$0xff] (!%p215_p3) }
   0x8   : > { %1114 = vmatpush3.bf16.msra.mxu0 (!%p215_p3), %v1183_v0  ;;  %1154 = vmatpush3.bf16.msra.mxu1 (!%p215_p3), %v1183_v0  ;;  %v567_v3 = vsel (!%p215_p3), %vm565_vm0, %v1185_v2, 0 }
   0x9   : > { %1115 = vmatprep.subr.bf16.mxu0 (!%p215_p3), %v1184_v1  ;;  %1152 = vmatprep.subr.bf16.mxu1 (!%p215_p3), %v1184_v1 }
   0xc   : > { %1116 = vmatpush3.bf16.msra.mxu0 (!%p215_p3), %v1184_v1  ;;  %1155 = vmatpush3.bf16.msra.mxu1 (!%p215_p3), %v1184_v1 }
   0xd   : > { %1157 = vmatprep.subr.msk.bf16.mxu0 (!%p215_p3), %vm565_vm0, %v1185_v2  ;;  %1158 = vmatprep.subr.msk.bf16.mxu1 (!%p215_p3), %vm565_vm0, %v1185_v2 }
   0xe   : > { %s1406_s20 = smov (!%p273_p4, %s1052_s20), 63 }
   0xf   : > { %s1053_s23 = sshll.u32 %s1406_s20, 2  ;;  %s1055_s27 = sshll.u32 %s1406_s20, 3 }
  0x10   : > { %s1279_s26 = scalar_lea.vmem %s1397_s0, %s1053_s23  ;;  %1118 = vmatpush3.bf16.msra.mxu0 %v567_v3  ;;  %1156 = vmatpush3.bf16.msra.mxu1 %v567_v3  ;;  %s1322_s5 = scalar_lea.vmem %s1400_s3, %s1055_s27 }
  0x11   : > { %v1186_v4 = vld [vmem:[%s1279_s26] sm:$0xff]   ;;  %v1188_v6 = vld [vmem:[%s1279_s26 + $0x8] sm:$0xff]   ;;  %v1190_v8 = vld [vmem:[%s1279_s26 + $0x10] sm:$0xff]  }
  0x12   : > { %v1187_v5 = vld [vmem:[%s1279_s26 + $0x40] sm:$0xff]   ;;  %1119 = vmatprep.mubr.msk.bf16.mxu0 %vm516_vm1, %v1186_v4  ;;  %v1189_v7 = vld [vmem:[%s1279_s26 + $0x48] sm:$0xff]   ;;  %v1191_v9 = vld [vmem:[%s1279_s26 + $0x50] sm:$0xff]  }
  0x13   : > { %1135 = vmatprep.mubr.msk.bf16.mxu1 %vm516_vm1, %v1187_v5  ;;  %1120 = vmatmul.mubr.msk.bf16.vlgmr.msra.gmra.mrb[0].mxu0 %vm516_vm1, %v1188_v6  ;;  %v1192_v10 = vld [vmem:[%s1279_s26 + $0x18] sm:$0xff]   ;;  %v1194_v12 = vld [vmem:[%s1279_s26 + $0x20] sm:$0xff]   ;;  %v1196_v14 = vld [vmem:[%s1279_s26 + $0x28] sm:$0xff]  }
  0x14   : > { %1136 = vmatmul.mubr.msk.bf16.vlgmr.msra.gmra.mrb[0].mxu1 %vm516_vm1, %v1189_v7  ;;  %1123 = vmatprep.mubr.msk.bf16.mxu0 %vm516_vm1, %v1190_v8  ;;  %v1193_v11 = vld [vmem:[%s1279_s26 + $0x58] sm:$0xff]   ;;  %v1195_v13 = vld [vmem:[%s1279_s26 + $0x60] sm:$0xff]   ;;  %v1197_v15 = vld [vmem:[%s1279_s26 + $0x68] sm:$0xff]  }
  0x15   : > { %1139 = vmatprep.mubr.msk.bf16.mxu1 %vm516_vm1, %v1191_v9  ;;  %v1198_v16 = vld [vmem:[%s1279_s26 + $0x30] sm:$0xff]   ;;  %v1200_v18 = vld [vmem:[%s1279_s26 + $0x38] sm:$0xff]  }
  0x16   : > { %v1199_v17 = vld [vmem:[%s1279_s26 + $0x70] sm:$0xff]   ;;  %v1201_v19 = vld [vmem:[%s1279_s26 + $0x78] sm:$0xff]  }
  0x1b   : > { %1124 = vmatmul.mubr.msk.bf16.gmra.mrb[4].mxu0 %vm516_vm1, %v1192_v10 }
  0x1c   : > { %1140 = vmatmul.mubr.msk.bf16.gmra.mrb[4].mxu1 %vm516_vm1, %v1193_v11  ;;  %1127 = vmatprep.mubr.msk.bf16.mxu0 %vm516_vm1, %v1194_v12 }
  0x1d   : > { %1143 = vmatprep.mubr.msk.bf16.mxu1 %vm516_vm1, %v1195_v13 }
  0x23   : > { %1128 = vmatmul.mubr.msk.bf16.gmra.mrb[8].mxu0 %vm516_vm1, %v1196_v14 }
  0x24   : > { %1144 = vmatmul.mubr.msk.bf16.gmra.mrb[8].mxu1 %vm516_vm1, %v1197_v15  ;;  %1131 = vmatprep.mubr.msk.bf16.mxu0 %vm516_vm1, %v1198_v16 }
  0x25   : > { %1147 = vmatprep.mubr.msk.bf16.mxu1 %vm516_vm1, %v1199_v17 }
  0x2b   : > { %1132 = vmatmul.mubr.msk.bf16.gmra.mrb[12].mxu0 %vm516_vm1, %v1200_v18 }
  0x2c   : > { %1148 = vmatmul.mubr.msk.bf16.gmra.mrb[12].mxu1 %vm516_vm1, %v1201_v19 }
  0xe6   : > { %v1121_v21 = vpop.f32.mrb[0].mxu0 }
  0xe7   : > { %v1137_v22 = vpop.f32.mrb[0].mxu1  ;;  %v838_v23 = vadd.f32 %v1121_v21, %v1317_v20  ;;  %v603_v25 = vpop.f32.mrb[1].mxu0 }
  0xe8   : > { %v854_v24 = vadd.f32 %v1137_v22, %v1317_v20  ;;  %v667_v26 = vpop.f32.mrb[1].mxu1  ;;  %v836_v27 = vadd.f32 %v1317_v20, %v603_v25  ;;  %v1122_v29 = vpop.f32.mrb[2].mxu0 }
  0xe9   : > { %v852_v28 = vadd.f32 %v1317_v20, %v667_v26  ;;  %v1138_v30 = vpop.f32.mrb[2].mxu1  ;;  %870 = vst [vmem:[%s1322_s5 + $0x10] sm:$0xff] %v838_v23  ;;  %v839_v31 = vadd.f32 %v1122_v29, %v1317_v20  ;;  %v606_v33 = vpop.f32.mrb[3].mxu0 }
  0xea   : > { %886 = vst [vmem:[%s1322_s5 + $0x90] sm:$0xff] %v854_v24  ;;  %v855_v32 = vadd.f32 %v1138_v30, %v1317_v20  ;;  %v670_v34 = vpop.f32.mrb[3].mxu1  ;;  %868 = vst [vmem:[%s1322_s5] sm:$0xff] %v836_v27  ;;  %v837_v35 = vadd.f32 %v1317_v20, %v606_v33 }
  0xeb   : > { %884 = vst [vmem:[%s1322_s5 + $0x80] sm:$0xff] %v852_v28  ;;  %v853_v36 = vadd.f32 %v1317_v20, %v670_v34  ;;  %871 = vst [vmem:[%s1322_s5 + $0x18] sm:$0xff] %v839_v31 }
  0xec   : > { %887 = vst [vmem:[%s1322_s5 + $0x98] sm:$0xff] %v855_v32  ;;  %869 = vst [vmem:[%s1322_s5 + $0x8] sm:$0xff] %v837_v35 }
  0xed   : > { %885 = vst [vmem:[%s1322_s5 + $0x88] sm:$0xff] %v853_v36 }
  0xee   : > { %v1125_v37 = vpop.f32.mrb[4].mxu0 }
  0xef   : > { %v1141_v38 = vpop.f32.mrb[4].mxu1  ;;  %v842_v39 = vadd.f32 %v1125_v37, %v1317_v20  ;;  %v619_v41 = vpop.f32.mrb[5].mxu0 }
  0xf0   : > { %v858_v40 = vadd.f32 %v1141_v38, %v1317_v20  ;;  %v683_v42 = vpop.f32.mrb[5].mxu1  ;;  %v840_v43 = vadd.f32 %v1317_v20, %v619_v41  ;;  %v1126_v45 = vpop.f32.mrb[6].mxu0 }
  0xf1   : > { %v856_v44 = vadd.f32 %v1317_v20, %v683_v42  ;;  %v1142_v46 = vpop.f32.mrb[6].mxu1  ;;  %874 = vst [vmem:[%s1322_s5 + $0x30] sm:$0xff] %v842_v39  ;;  %v843_v47 = vadd.f32 %v1126_v45, %v1317_v20  ;;  %v622_v49 = vpop.f32.mrb[7].mxu0 }
  0xf2   : > { %890 = vst [vmem:[%s1322_s5 + $0xb0] sm:$0xff] %v858_v40  ;;  %v859_v48 = vadd.f32 %v1142_v46, %v1317_v20  ;;  %v686_v50 = vpop.f32.mrb[7].mxu1  ;;  %872 = vst [vmem:[%s1322_s5 + $0x20] sm:$0xff] %v840_v43  ;;  %v841_v51 = vadd.f32 %v1317_v20, %v622_v49 }
  0xf3   : > { %888 = vst [vmem:[%s1322_s5 + $0xa0] sm:$0xff] %v856_v44  ;;  %v857_v52 = vadd.f32 %v1317_v20, %v686_v50  ;;  %875 = vst [vmem:[%s1322_s5 + $0x38] sm:$0xff] %v843_v47 }
  0xf4   : > { %891 = vst [vmem:[%s1322_s5 + $0xb8] sm:$0xff] %v859_v48  ;;  %873 = vst [vmem:[%s1322_s5 + $0x28] sm:$0xff] %v841_v51 }
  0xf5   : > { %889 = vst [vmem:[%s1322_s5 + $0xa8] sm:$0xff] %v857_v52 }
  0xf6   : > { %v1129_v53 = vpop.f32.mrb[8].mxu0 }
  0xf7   : > { %v1145_v54 = vpop.f32.mrb[8].mxu1  ;;  %v846_v55 = vadd.f32 %v1129_v53, %v1317_v20  ;;  %v635_v57 = vpop.f32.mrb[9].mxu0 }
  0xf8   : > { %v862_v56 = vadd.f32 %v1145_v54, %v1317_v20  ;;  %v699_v58 = vpop.f32.mrb[9].mxu1  ;;  %v844_v59 = vadd.f32 %v1317_v20, %v635_v57  ;;  %v1130_v61 = vpop.f32.mrb[10].mxu0 }
  0xf9   : > { %v860_v60 = vadd.f32 %v1317_v20, %v699_v58  ;;  %v1146_v62 = vpop.f32.mrb[10].mxu1  ;;  %878 = vst [vmem:[%s1322_s5 + $0x50] sm:$0xff] %v846_v55  ;;  %v847_v63 = vadd.f32 %v1130_v61, %v1317_v20  ;;  %v638_v1 = vpop.f32.mrb[11].mxu0 }
  0xfa   : > { %894 = vst [vmem:[%s1322_s5 + $0xd0] sm:$0xff] %v862_v56  ;;  %v863_v0 = vadd.f32 %v1146_v62, %v1317_v20  ;;  %v702_v2 = vpop.f32.mrb[11].mxu1  ;;  %876 = vst [vmem:[%s1322_s5 + $0x40] sm:$0xff] %v844_v59  ;;  %v845_v3 = vadd.f32 %v1317_v20, %v638_v1 }
  0xfb   : > { %892 = vst [vmem:[%s1322_s5 + $0xc0] sm:$0xff] %v860_v60  ;;  %v861_v4 = vadd.f32 %v1317_v20, %v702_v2  ;;  %879 = vst [vmem:[%s1322_s5 + $0x58] sm:$0xff] %v847_v63 }
  0xfc   : > { %895 = vst [vmem:[%s1322_s5 + $0xd8] sm:$0xff] %v863_v0  ;;  %877 = vst [vmem:[%s1322_s5 + $0x48] sm:$0xff] %v845_v3 }
  0xfd   : > { %893 = vst [vmem:[%s1322_s5 + $0xc8] sm:$0xff] %v861_v4 }
  0xfe   : > { %v1133_v5 = vpop.f32.mrb[12].mxu0 }
  0xff   : > { %v1149_v6 = vpop.f32.mrb[12].mxu1  ;;  %v850_v7 = vadd.f32 %v1133_v5, %v1317_v20  ;;  %v651_v9 = vpop.f32.mrb[13].mxu0 }
 0x100   : > { %v866_v8 = vadd.f32 %v1149_v6, %v1317_v20  ;;  %v715_v10 = vpop.f32.mrb[13].mxu1  ;;  %v848_v11 = vadd.f32 %v1317_v20, %v651_v9  ;;  %v1134_v13 = vpop.f32.mrb[14].mxu0 }
 0x101   : > { %v864_v12 = vadd.f32 %v1317_v20, %v715_v10  ;;  %v1150_v14 = vpop.f32.mrb[14].mxu1  ;;  %882 = vst [vmem:[%s1322_s5 + $0x70] sm:$0xff] %v850_v7  ;;  %v851_v15 = vadd.f32 %v1134_v13, %v1317_v20  ;;  %v654_v17 = vpop.f32.mrb[15].mxu0 }
 0x102   : > { %898 = vst [vmem:[%s1322_s5 + $0xf0] sm:$0xff] %v866_v8  ;;  %v867_v16 = vadd.f32 %v1150_v14, %v1317_v20  ;;  %v718_v18 = vpop.f32.mrb[15].mxu1  ;;  %880 = vst [vmem:[%s1322_s5 + $0x60] sm:$0xff] %v848_v11  ;;  %v849_v19 = vadd.f32 %v1317_v20, %v654_v17 }
 0x103   : > { %896 = vst [vmem:[%s1322_s5 + $0xe0] sm:$0xff] %v864_v12  ;;  %v865_v21 = vadd.f32 %v1317_v20, %v718_v18  ;;  %883 = vst [vmem:[%s1322_s5 + $0x78] sm:$0xff] %v851_v15 }
 0x104   : > { %899 = vst [vmem:[%s1322_s5 + $0xf8] sm:$0xff] %v867_v16  ;;  %881 = vst [vmem:[%s1322_s5 + $0x68] sm:$0xff] %v849_v19 }
 0x105   : > { %897 = vst [vmem:[%s1322_s5 + $0xe8] sm:$0xff] %v865_v21 }
 0x106 PF: > { %s13_s14 = sadd.s32 1, %s1224_s14   ;;  %s1401_s12 = smov %s1220_s13 }
 0x107   : > { %p10_p5 = scmp.ge.s32.totalorder %s13_s14, 4   ;;  %s1402_s13 = smov %s1404_s15 }
 0x109   :  { %12 = sbr.rel (!%p10_p5) target bundleno = 2 (0x2), region = 76 }

</bundles_post_ra>
